<compile_context>
chip_gen: v5e
topology: v5e:2x2
jax: 0.10.0
libtpu: 0.0.40
codegen_flags: <defaults>
</compile_context>

<pallas_src>
import functools
import math

import jax
import jax.numpy as jnp
import numpy as np
from jax.experimental import pallas as pl
from jax.experimental.pallas import tpu as pltpu

_LANES = 128
_SUBLANES = 8
_MAX_TILE_ROWS = 512          # 512 x 128 x 4B = 256 KiB per input per step


def _mse_loss_kernel(y_true_ref, y_pred_ref, out_ref, acc_ref, *,
                     T, log_h, inv_scale, weigh_under, tile_rows):
    i = pl.program_id(0)

    @pl.when(i == 0)
    def _init():
        acc_ref[...] = jnp.zeros_like(acc_ref)

    # DMA'd in original dtype; cast on the VPU (free vs. the HBM bytes saved).
    yt = y_true_ref[...].astype(jnp.float32)          # (tile_rows, 128)
    yp = y_pred_ref[...].astype(jnp.float32)

    r = yp - yt
    err = r * r
    # y_pred < |y_pred|  <=>  y_pred is strictly negative
    penalty = jnp.where(yp < 0.0, jnp.float32(weigh_under), jnp.float32(1.0))

    # In-kernel exponential-decay weights (no third DMA stream).
    rows = jax.lax.broadcasted_iota(jnp.int32, (tile_rows, _LANES), 0)
    cols = jax.lax.broadcasted_iota(jnp.int32, (tile_rows, _LANES), 1)
    idx = (i * tile_rows + rows) * _LANES + cols      # global flat time index
    expo = (T - 1 - idx).astype(jnp.float32)
    # EUP exp(); mask padded tail (idx >= T) to exactly 0.
    w = jnp.where(idx < T, jnp.exp(expo * jnp.float32(log_h)), jnp.float32(0.0))

    acc_ref[...] += jnp.sum(err * penalty * w)

    @pl.when(i == pl.num_programs(0) - 1)
    def _finalize():
        # scale = 1 / (sum_of_weights * T)  — folded normalizer + mean.
        out_ref[...] = acc_ref[...] * jnp.float32(inv_scale)


def mse_loss(y_true: jnp.ndarray, y_pred: jnp.ndarray,
             weigh_under: float, weighting_factor: float) -> jnp.ndarray:
    assert y_true.ndim == 1 and y_pred.shape == y_true.shape
    T = int(y_true.shape[0])

    h = float(weighting_factor)
    log_h = math.log(h)
    # Closed-form geometric-series normalizer (more robust than summing
    # underflowed h^k terms; matches the reference to f32 precision).
    norm = float(T) if h == 1.0 else (1.0 - h ** T) / (1.0 - h)
    inv_scale = 1.0 / (norm * float(T))

    # --- layout: sublane-dense (rows, 128) slab, padded with zeros ----------
    rows = pl.cdiv(T, _LANES)
    rows = ((rows + _SUBLANES - 1) // _SUBLANES) * _SUBLANES
    if rows > _MAX_TILE_ROWS:
        tile_rows = _MAX_TILE_ROWS
        rows = ((rows + tile_rows - 1) // tile_rows) * tile_rows
    else:
        tile_rows = rows
    pad = rows * _LANES - T

    # Keep the caller's dtype (no host-side f32 upcast); zero padding gives
    # residual == 0 on the tail, and the in-kernel mask zeroes its weight.
    yt2 = jnp.pad(y_true, (0, pad)).reshape(rows, _LANES)
    yp2 = jnp.pad(y_pred, (0, pad)).reshape(rows, _LANES)

    grid = (rows // tile_rows,)

    kernel = functools.partial(
        _mse_loss_kernel,
        T=T, log_h=log_h, inv_scale=inv_scale,
        weigh_under=float(weigh_under), tile_rows=tile_rows)

    out = pl.pallas_call(
        kernel,
        out_shape=jax.ShapeDtypeStruct((1, 1), jnp.float32),
        grid=grid,
        in_specs=[
            pl.BlockSpec((tile_rows, _LANES), lambda i: (i, 0)),
            pl.BlockSpec((tile_rows, _LANES), lambda i: (i, 0)),
        ],
        out_specs=pl.BlockSpec((1, 1), lambda i: (0, 0)),
        scratch_shapes=[pltpu.VMEM((1, 1), jnp.float32)],
        compiler_params=pltpu.CompilerParams(
            dimension_semantics=("arbitrary",)),   # reduction axis
    )(yt2, yp2)

    return out[0, 0]


def _reference(y_true, y_pred, weigh_under, weighting_factor):
    """Pure-JAX mirror of the PyTorch module (weights summed, not closed form)."""
    residuals = y_pred - y_true
    errors = residuals ** 2
    under = y_pred < jnp.abs(y_pred)
    errors = jnp.where(under, errors * weigh_under, errors)
    T = y_true.shape[0]
    expo = jnp.arange(T - 1, -1, -1, dtype=jnp.float32)
    w = jnp.power(jnp.float32(weighting_factor), expo)
    w = w / jnp.sum(w)
    return jnp.mean(errors * w)


if __name__ == "__main__":
    weigh_under = 2.0
    weighting_factor = 0.95

    key = jax.random.PRNGKey(0)

    # Test 1: T = 128 (exactly one sublane-dense (8, 128) slab).
    # Test 2: T = 1000 (not a multiple of 128 — exercises padding/masking).
    for T in (128, 1000):
        key, k1, k2 = jax.random.split(key, 3)
        y_true = jax.random.normal(k1, (T,), dtype=jnp.float32)
        y_pred = jax.random.normal(k2, (T,), dtype=jnp.float32)

        out = jax.block_until_ready(
            mse_loss(y_true, y_pred, weigh_under, weighting_factor))
        ref = jax.block_until_ready(
            _reference(y_true, y_pred, weigh_under, weighting_factor))
        np.testing.assert_allclose(np.asarray(out), np.asarray(ref),
                                   rtol=1e-4, atol=1e-6)

    print("KERNEL_OK")
</pallas_src>

<mosaic_0001>
module attributes {stable_mosaic.version = 11 : i64} {
  func.func @_mse_loss_kernel(%arg0: i32, %arg1: memref<8x128xf32, #tpu.memory_space<vmem>>, %arg2: memref<8x128xf32, #tpu.memory_space<vmem>>, %arg3: memref<1x1xf32, #tpu.memory_space<vmem>>, %arg4: memref<1x1xf32, #tpu.memory_space<vmem>>) attributes {dimension_semantics = [#tpu.dimension_semantics<arbitrary>], iteration_bounds = array<i64: 1>, scalar_prefetch = 0 : i64, scratch_operands = 1 : i64, tpu.core_type = #tpu.core_type<tc>, window_params = [{transform_indices = @transform_0, window_bounds = array<i64: 8, 128>}, {transform_indices = @transform_1, window_bounds = array<i64: 8, 128>}, {pipeline_mode = #tpu.pipeline_mode<synchronous>, transform_indices = @transform_2, window_bounds = array<i64: 1, 1>}]} {
    %c0_i32 = arith.constant 0 : i32
    %0 = arith.cmpi eq, %arg0, %c0_i32 : i32
    %1 = arith.extui %0 : i1 to i32
    %c0_i32_0 = arith.constant 0 : i32
    %2 = arith.cmpi ne, %1, %c0_i32_0 : i32
    scf.if %2 {
      %cst_16 = arith.constant 0.000000e+00 : f32
      %43 = vector.broadcast %cst_16 : f32 to vector<1x1xf32>
      %c0_17 = arith.constant 0 : index
      %c0_18 = arith.constant 0 : index
      %44 = vector.load %arg4[%c0_17, %c0_18] : memref<1x1xf32, #tpu.memory_space<vmem>>, vector<1x1xf32>
      tpu.vector_store %arg4[%c0_17, %c0_18], %43 {strides = array<i32>} : memref<1x1xf32, #tpu.memory_space<vmem>>, vector<1x1xf32>,
    } else {
    }
    %c0 = arith.constant 0 : index
    %c0_1 = arith.constant 0 : index
    %3 = vector.load %arg1[%c0, %c0_1] : memref<8x128xf32, #tpu.memory_space<vmem>>, vector<8x128xf32>
    %c0_2 = arith.constant 0 : index
    %c0_3 = arith.constant 0 : index
    %4 = vector.load %arg2[%c0_2, %c0_3] : memref<8x128xf32, #tpu.memory_space<vmem>>, vector<8x128xf32>
    %5 = arith.subf %4, %3 : vector<8x128xf32>
    %6 = arith.mulf %5, %5 : vector<8x128xf32>
    %cst = arith.constant 0.000000e+00 : f32
    %7 = vector.broadcast %cst : f32 to vector<8x128xf32>
    %8 = arith.cmpf olt, %4, %7 : vector<8x128xf32>
    %cst_4 = arith.constant 2.000000e+00 : f32
    %cst_5 = arith.constant 1.000000e+00 : f32
    %9 = vector.broadcast %cst_4 : f32 to vector<8x128xf32>
    %10 = vector.broadcast %cst_5 : f32 to vector<8x128xf32>
    %11 = arith.select %8, %9, %10 : vector<8x128xi1>, vector<8x128xf32>
    %12 = tpu.iota {dimensions = array<i32: 0>} : vector<8x128xi32>
    %13 = tpu.iota {dimensions = array<i32: 1>} : vector<8x128xi32>
    %c8_i32 = arith.constant 8 : i32
    %14 = arith.muli %arg0, %c8_i32 : i32
    %15 = vector.broadcast %14 : i32 to vector<8x128xi32>
    %16 = arith.addi %15, %12 : vector<8x128xi32>
    %c128_i32 = arith.constant 128 : i32
    %17 = vector.broadcast %c128_i32 : i32 to vector<8x128xi32>
    %18 = arith.muli %16, %17 : vector<8x128xi32>
    %19 = arith.addi %18, %13 : vector<8x128xi32>
    %c127_i32 = arith.constant 127 : i32
    %20 = vector.broadcast %c127_i32 : i32 to vector<8x128xi32>
    %21 = arith.subi %20, %19 : vector<8x128xi32>
    %22 = arith.sitofp %21 : vector<8x128xi32> to vector<8x128xf32>
    %c128_i32_6 = arith.constant 128 : i32
    %23 = vector.broadcast %c128_i32_6 : i32 to vector<8x128xi32>
    %24 = arith.cmpi slt, %19, %23 : vector<8x128xi32>
    %cst_7 = arith.constant -0.0512932949 : f32
    %25 = vector.broadcast %cst_7 : f32 to vector<8x128xf32>
    %26 = arith.mulf %22, %25 : vector<8x128xf32>
    %27 = math.exp %26 : vector<8x128xf32>
    %cst_8 = arith.constant 0.000000e+00 : f32
    %28 = vector.broadcast %cst_8 : f32 to vector<8x128xf32>
    %29 = arith.select %24, %27, %28 : vector<8x128xi1>, vector<8x128xf32>
    %c0_9 = arith.constant 0 : index
    %c0_10 = arith.constant 0 : index
    %30 = vector.load %arg4[%c0_9, %c0_10] : memref<1x1xf32, #tpu.memory_space<vmem>>, vector<1x1xf32>
    %31 = arith.mulf %6, %11 : vector<8x128xf32>
    %32 = arith.mulf %31, %29 : vector<8x128xf32>
    %33 = vector.shape_cast %32 : vector<8x128xf32> to vector<1x8x128xf32>
    %cst_11 = arith.constant dense<0.000000e+00> : vector<1xf32>
    %34 = vector.multi_reduction <add>, %33, %cst_11 [1, 2] : vector<1x8x128xf32> to vector<1xf32>
    %35 = vector.shape_cast %34 : vector<1xf32> to vector<1x1x1xf32>
    %36 = vector.extract %35[0, 0, 0] : f32 from vector<1x1x1xf32>
    %37 = vector.broadcast %36 : f32 to vector<1x1xf32>
    %38 = arith.addf %30, %37 : vector<1x1xf32>
    %c0_12 = arith.constant 0 : index
    %c0_13 = arith.constant 0 : index
    %39 = vector.load %arg4[%c0_12, %c0_13] : memref<1x1xf32, #tpu.memory_space<vmem>>, vector<1x1xf32>
    tpu.vector_store %arg4[%c0_12, %c0_13], %38 {strides = array<i32>} : memref<1x1xf32, #tpu.memory_space<vmem>>, vector<1x1xf32>,
    %c0_i32_14 = arith.constant 0 : i32
    %40 = arith.cmpi eq, %arg0, %c0_i32_14 : i32
    %41 = arith.extui %40 : i1 to i32
    %c0_i32_15 = arith.constant 0 : i32
    %42 = arith.cmpi ne, %41, %c0_i32_15 : i32
    scf.if %42 {
      %c0_16 = arith.constant 0 : index
      %c0_17 = arith.constant 0 : index
      %43 = vector.load %arg4[%c0_16, %c0_17] : memref<1x1xf32, #tpu.memory_space<vmem>>, vector<1x1xf32>
      %cst_18 = arith.constant 3.91175796E-4 : f32
      %44 = vector.broadcast %cst_18 : f32 to vector<1x1xf32>
      %45 = arith.mulf %43, %44 : vector<1x1xf32>
      %c0_19 = arith.constant 0 : index
      %c0_20 = arith.constant 0 : index
      %46 = vector.load %arg3[%c0_19, %c0_20] : memref<1x1xf32, #tpu.memory_space<vmem>>, vector<1x1xf32>
      tpu.vector_store %arg3[%c0_19, %c0_20], %45 {strides = array<i32>} : memref<1x1xf32, #tpu.memory_space<vmem>>, vector<1x1xf32>,
    } else {
    }
    return
  }
  func.func @transform_0(%arg0: i32) -> (i32, i32) {
    %c0_i32 = arith.constant 0 : i32
    %c0_i32_0 = arith.constant 0 : i32
    return %arg0, %c0_i32 : i32, i32
  }
  func.func @transform_1(%arg0: i32) -> (i32, i32) {
    %c0_i32 = arith.constant 0 : i32
    %c0_i32_0 = arith.constant 0 : i32
    return %arg0, %c0_i32 : i32, i32
  }
  func.func @transform_2(%arg0: i32) -> (i32, i32) {
    %c0_i32 = arith.constant 0 : i32
    %c0_i32_0 = arith.constant 0 : i32
    %c0_i32_1 = arith.constant 0 : i32
    return %c0_i32, %c0_i32_0 : i32, i32
  }
}

</mosaic_0001>

<bundles_post_ra>
// kernel: tpu_custom_call.1
= control target key start
LH: loop header
LB: loop body
LE: loop exit
PB: predicated region body
PF: predicated region fallthrough
CT: control target
= control target key end

     0   :  { %7 = vsyncpa [#allocation4], 0  ;;  %s227_s0 = inlined_call_operand.hbm [shape: f32[8,128], index: 0, kind: input, shape index: {}]   ;;  %s228_s1 = inlined_call_operand.hbm [shape: f32[8,128], index: 1, kind: input, shape index: {}]   ;;  %s229_s2 = inlined_call_operand.hbm [shape: f32[1,1], index: 2, kind: output, shape index: {}]  }
   0x1   :  { %8 = vsyncpa [#allocation7], 0 }
   0x2   :  { %9 = vsyncpa [#allocation5], 0  ;;  %s15_s11 = sshll.u32 %s227_s0, 4  ;;  %s195_s12 = smov [#allocation3]   ;;  %s16_s11 = int_to_ptr.hbm [resolvable:$true] %s15_s11 }
   0x3   :  { %s17_s13 = sshll.u32 %s195_s12, 4  ;;  %s26_s16 = sshll.u32 %s228_s1, 4  ;;  %s18_s13 = int_to_ptr.vmem [resolvable:$true] %s17_s13  ;;  %s27_s16 = int_to_ptr.hbm [resolvable:$true] %s26_s16 }
   0x4   :  { %20 = dma.hbm_to_vmem [thread:$0]  %s16_s11, 128, %s18_s13, [#allocation4]  }
   0x5   :  { %s196_s17 = smov [#allocation6]  }
   0x6   :  { %s28_s18 = sshll.u32 %s196_s17, 4  ;;  %s29_s18 = int_to_ptr.vmem [resolvable:$true] %s28_s18 }
   0x7   :  { %31 = dma.hbm_to_vmem [thread:$0]  %s27_s16, 128, %s29_s18, [#allocation7]  }
   0x8   :  { %189 = dma.done.wait [#allocation4], 128  }
   0x9   :  { %190 = vsyncadd [#allocation4], 4294967168 }
   0xa   :  { %191 = dma.done.wait [#allocation7], 128  }
   0xb   :  { %192 = vsyncadd [#allocation7], 4294967168  ;;  %v52_v0 = vlaneseq  ;;  %v46_v6 = vld [vmem:[#allocation3] sm:$0xff]  ;;  %v47_v7 = vld [vmem:[#allocation6] sm:$0xff]  ;;  %v197_v13 = vmov 1.0   ;;  %vm44_vm2 = vcmask 0  }
   0xc   :  { %v48_v9 = vsub.f32 %v47_v7, %v46_v6  ;;  %vm50_vm0 = vcmp.lt.f32.partialorder %v47_v7, 0.0  ;;  %v198_v19 = vmov 0.0   ;;  %s199_s1 = smov [#allocation8]   ;;  %s97_s22 = sshll.u32 %s229_s2, 4  ;;  %s98_s22 = int_to_ptr.hbm [resolvable:$true] %s97_s22 }
   0xd   :  { %v53_v1 = vshrl.u32 %v52_v0, 7  ;;  %v55_v2 = vand.u32 127, %v52_v0  ;;  %v51_v14 = vsel %vm50_vm0, 2.0, %v197_v13  ;;  %45 = vst.msk [vmem:[#allocation2] sm:$0x1] %vm44_vm2, %v198_v19  ;;  %s95_s19 = sshll.u32 %s199_s1, 4  ;;  %s96_s19 = int_to_ptr.vmem [resolvable:$true] %s95_s19 }
   0xe   :  { %v49_v12 = vmul.f32 %v48_v9, %v48_v9 }
   0xf   :  { %v59_v3 = vmul.u32 128, %v53_v1 }
  0x10   :  { %v69_v15 = vmul.f32 %v51_v14, %v49_v12 }
  0x11   :  { %v60_v4 = vadd.s32 %v59_v3, %v55_v2 }
  0x13   :  { %v61_v5 = vsub.s32 127, %v60_v4  ;;  %vm63_vm1 = vcmp.lt.s32.totalorder %v60_v4, 128 }
  0x14   :  { %v68_v27 = vld [vmem:[#allocation2] sm:$0x1] }
  0x15   :  { %v62_v8 = vcvt.s32.f32 %v61_v5 }
  0x17   :  { %v64_v10 = vmul.f32 -0.051293295, %v62_v8 }
  0x19   :  { %v65_v11 = vmul.f32 1.442695, %v64_v10 }
  0x1b   :  { %115 = vpow2.f32 %v65_v11 }
  0x21   :  { %v116_v16 = vpop.eup %115 }
  0x22   :  { %v67_v17 = vsel %vm63_vm1, %v116_v16, 0.0 }
  0x23   :  { %v70_v18 = vmul.f32 %v69_v15, %v67_v17 }
  0x25   :  { %71 = vadd.xlane.f32.xlu0 %v70_v18 }
  0x98   :  { %v72_v20 = vpop.xlane.xlu0 %71 }
  0x99   :  { %v73_v21 = vrot.slane %v72_v20, 4 }
  0x9b   :  { %v74_v22 = vadd.f32 %v73_v21, %v72_v20 }
  0x9d   :  { %v75_v23 = vrot.slane %v74_v22, 2 }
  0x9f   :  { %v76_v24 = vadd.f32 %v75_v23, %v74_v22 }
  0xa1   :  { %v77_v25 = vrot.slane %v76_v24, 1 }
  0xa3   :  { %v78_v26 = vadd.f32 %v77_v25, %v76_v24 }
  0xa5   :  { %108 = vpush %v78_v26 }
  0xd6   :  { %s109_s0 = spop %108 }
  0xd7   :  { %v80_v28 = vstv %s109_s0 }
  0xd8   :  { %v81_v29 = vadd.f32 %v80_v28, %v68_v27 }
  0xda   :  { %83 = vst.msk [vmem:[#allocation2] sm:$0x1] %vm44_vm2, %v81_v29 }
  0xe1   :  { %v87_v30 = vld [vmem:[#allocation2] sm:$0x1] }
  0xe2   :  { %v88_v31 = vmul.f32 0.0003911758, %v87_v30 }
  0xe4   :  { %89 = vst.msk [vmem:[#allocation8] sm:$0x1] %vm44_vm2, %v88_v31 }
  0xe5   :  { %100 = dma.vmem_to_hbm [thread:$0]  %s96_s19, 16, %s98_s22, [#allocation5]  }
  0xe6   :  { %193 = dma.done.wait [#allocation5], 16  }
  0xe7   :  { %194 = vsyncadd [#allocation5], 4294967280 }
  0xe8   :  { %105 = vsyncpa [#allocation4], 1 }
  0xe9   :  { %106 = vsyncpa [#allocation7], 1 }
  0xea   :  { %107 = vsyncpa [#allocation5], 1 }

</bundles_post_ra>
